<compile_context>
chip_gen: v7x
topology: tpu7x:2x2x1
jax: 0.10.0
libtpu: 0.0.40
codegen_flags: <defaults>
</compile_context>

<pallas_src>
import functools

import jax
import jax.numpy as jnp
import numpy as np
from jax import lax
from jax.experimental import pallas as pl
from jax.experimental.pallas import tpu as pltpu

DIM = 4  # box dim (left, right, top, bottom)


def _dense_iou_kernel(ind_ref, tgt_ref, pred_ref, iou_ref, *, width, radius):
    # ind_ref  (SMEM, i32[B]):       flat spatial indices; only [0] is used
    # tgt_ref  (SMEM, f32[B*4]):     target boxes (l, r, t, b); only [0:4] used
    # pred_ref (VMEM, [4, W, H]):    pred box planes for batch element [0]
    # iou_ref  (VMEM, f32[W, H]):    dense IoU map output (unpadded)
    W, H = iou_ref.shape

    # ---- scalar prep (scalar unit, free slots) ----
    # Matches torch: center_w = ind % width, center_h = int(ind / width).
    # Assumes ind >= 0 (guaranteed by the tracking label generation / harness).
    ind0 = ind_ref[0]
    w_i32 = jnp.int32(width)
    c_w = lax.rem(ind0, w_i32).astype(jnp.float32)
    c_h = lax.div(ind0, w_i32).astype(jnp.float32)

    t_l = tgt_ref[0]
    t_r = tgt_ref[1]
    t_t = tgt_ref[2]
    t_b = tgt_ref[3]

    # ---- dense map coordinates: row ii == center_h + r_h, col jj == center_w + r_w
    # Cast to f32 immediately so the integer iota planes die early (vreg pressure).
    ii = lax.broadcasted_iota(jnp.int32, (W, H), 0).astype(jnp.float32)
    jj = lax.broadcasted_iota(jnp.int32, (W, H), 1).astype(jnp.float32)
    r_h = ii - c_h                       # exact (small integers in f32)
    r_w = jj - c_w

    # |r_h| <= radius and |r_w| <= radius, computed right away from the live
    # f32 offsets (exact compares on small integers in f32).
    rad = float(radius)
    in_window = ((r_h >= -rad) & (r_h <= rad) &
                 (r_w >= -rad) & (r_w <= rad))

    # target box shifted exactly as in the PyTorch loop
    t_wl = t_l + r_w
    t_wr = t_r - r_w
    t_ht = t_t + r_h
    t_hb = t_b - r_h
    # skip condition on the shifted target box (same as the PyTorch loop)
    target_ok = (t_wl >= 0.0) & (t_wr >= 0.0) & (t_ht >= 0.0) & (t_hb >= 0.0)
    # The original in-bounds check (0 <= center + r < width) is tautological
    # here: the cell coordinate IS center + r and the output is exactly (W, H).
    mask = in_window & target_ok

    # pred box gathered at linear index (c_h+r_h)*W + (c_w+r_w) == (ii, jj)
    # since W == H; cast to f32 in-kernel (no wrapper-side astype pass).
    p_l = pred_ref[0].astype(jnp.float32)
    p_r = pred_ref[1].astype(jnp.float32)
    p_t = pred_ref[2].astype(jnp.float32)
    p_b = pred_ref[3].astype(jnp.float32)

    target_area = (t_wl + t_wr) * (t_ht + t_hb)
    pred_area = (p_l + p_r) * (p_t + p_b)
    w_intersect = jnp.minimum(p_l, t_wl) + jnp.minimum(p_r, t_wr)
    h_intersect = jnp.minimum(p_b, t_hb) + jnp.minimum(p_t, t_ht)
    area_intersect = w_intersect * h_intersect
    area_union = target_area + pred_area - area_intersect
    # exact reciprocal (keeps the 1e-4 tolerance; approx would be ~1e-3 rel.)
    iou = (area_intersect + 1.0) * pl.reciprocal(area_union + 1.0, approx=False)

    iou_ref[...] = jnp.where(mask, iou, 0.0)


@functools.partial(jax.jit, static_argnames=("radius",))
def dense_iou_pred(output, ind, target, radius=10):
    """JAX/Pallas equivalent of DenseIouPred.forward.

    output: (num_images, num_sequences, 4, W, H)
    ind:    (num_images, num_sequences, 1) integer flat spatial index (>= 0)
    target: (num_images, num_sequences, 4)
    returns iou_map: (W, H) float32
    """
    W, H = output.shape[-2], output.shape[-1]
    assert W == H, "kernel assumes a square map (as in the reference 72x72 case)"

    # Flat scalar views for SMEM (reshape is a free bitcast; casts are no-ops
    # at the expected dtypes).
    ind_s = ind.reshape(-1).astype(jnp.int32)
    tgt_s = target.reshape(-1).astype(jnp.float32)

    kernel = functools.partial(_dense_iou_kernel, width=W, radius=int(radius))

    itemsize = jnp.dtype(output.dtype).itemsize
    cost = pl.CostEstimate(
        flops=30 * W * H,
        transcendentals=W * H,                       # reciprocal per element
        bytes_accessed=DIM * W * H * itemsize + W * H * 4 + 64,
    )

    return pl.pallas_call(
        kernel,
        out_shape=jax.ShapeDtypeStruct((W, H), jnp.float32),
        grid=(1,),
        in_specs=[
            # scalars straight to SMEM, no wrapper producers
            pl.BlockSpec(memory_space=pltpu.MemorySpace.SMEM),   # ind
            pl.BlockSpec(memory_space=pltpu.MemorySpace.SMEM),   # target box
            # batch element [0, 0] selected by the BlockSpec (squeezed dims);
            # only that (4, W, H) block is DMA'd from HBM.
            pl.BlockSpec((None, None, DIM, W, H),
                         lambda i: (0, 0, 0, 0, 0)),
        ],
        out_specs=pl.BlockSpec((W, H), lambda i: (0, 0)),
        cost_estimate=cost,
    )(ind_s, tgt_s, output)


def _reference(output, ind, target, radius):
    """Pure numpy transcription of the PyTorch module for verification."""
    output = np.asarray(output, dtype=np.float64)
    target = np.asarray(target, dtype=np.float64)
    W, H = output.shape[-2], output.shape[-1]
    out0 = output.reshape(-1, DIM, W, H)[0]
    tgt0 = target.reshape(-1, DIM)[0]
    ind0 = int(np.asarray(ind).reshape(-1)[0])
    c_w = float(int(ind0 % W))
    c_h = float(int(ind0 / W))
    iou_map = np.zeros((W, H), dtype=np.float32)
    for r_w in range(-radius, radius + 1):
        for r_h in range(-radius, radius + 1):
            t_wl = tgt0[0] + r_w
            t_wr = tgt0[1] - r_w
            t_ht = tgt0[2] + r_h
            t_hb = tgt0[3] - r_h
            if t_wl < 0.0 or t_wr < 0.0 or t_ht < 0.0 or t_hb < 0.0:
                continue
            if (c_h + r_h < 0.0 or c_h + r_h >= W or
                    c_w + r_w < 0.0 or c_w + r_w >= W):
                continue
            lin = int((c_h + r_h) * W + (c_w + r_w))
            pred = out0[:, lin // H, lin % H]
            p_l, p_r, p_t, p_b = pred[0], pred[1], pred[2], pred[3]
            target_area = (t_wl + t_wr) * (t_ht + t_hb)
            pred_area = (p_l + p_r) * (p_t + p_b)
            w_int = min(p_l, t_wl) + min(p_r, t_wr)
            h_int = min(p_b, t_hb) + min(p_t, t_ht)
            a_int = w_int * h_int
            a_uni = target_area + pred_area - a_int
            iou = (a_int + 1.0) / (a_uni + 1.0)
            iou_map[int(c_h + r_h)][int(c_w + r_w)] = iou
    return iou_map


if __name__ == "__main__":
    key = jax.random.PRNGKey(0)
    k1, k2, k3 = jax.random.split(key, 3)

    num_images, num_sequences = 2, 2
    W = H = 72          # matches the module's documented 72x72 map
    radius = 10

    # pred box maps (positive offsets, like ltrb regression outputs)
    output = jax.random.uniform(
        k1, (num_images, num_sequences, DIM, W, H),
        dtype=jnp.float32, minval=0.5, maxval=6.0)
    # target boxes (positive ltrb offsets)
    target = jax.random.uniform(
        k2, (num_images, num_sequences, DIM),
        dtype=jnp.float32, minval=2.0, maxval=8.0)
    # flat spatial indices (non-negative, as in the real label generation)
    ind = jax.random.randint(
        k3, (num_images, num_sequences, 1), minval=0, maxval=W * H,
        dtype=jnp.int32)

    iou_map = dense_iou_pred(output, ind, target, radius=radius)
    iou_map = jax.block_until_ready(iou_map)

    ref = _reference(np.asarray(output), np.asarray(ind), np.asarray(target), radius)
    np.testing.assert_allclose(np.asarray(iou_map), ref, rtol=1e-4, atol=1e-4)

    print("KERNEL_OK")
</pallas_src>

<mosaic_0001>
module attributes {stable_mosaic.version = 11 : i64} {
  func.func @_dense_iou_kernel(%arg0: i32, %arg1: memref<4xi32, #tpu.memory_space<smem>>, %arg2: memref<16xf32, #tpu.memory_space<smem>>, %arg3: memref<1x1x4x72x72xf32, #tpu.memory_space<vmem>>, %arg4: memref<72x72xf32, #tpu.memory_space<vmem>>) attributes {dimension_semantics = [#tpu.dimension_semantics<arbitrary>], iteration_bounds = array<i64: 1>, scalar_prefetch = 0 : i64, scratch_operands = 0 : i64, tpu.core_type = #tpu.core_type<tc>, window_params = [{transform_indices = @transform_0, window_bounds = array<i64: 4>}, {transform_indices = @transform_1, window_bounds = array<i64: 16>}, {transform_indices = @transform_2, window_bounds = array<i64: 1, 1, 4, 72, 72>}, {pipeline_mode = #tpu.pipeline_mode<synchronous>, transform_indices = @transform_3, window_bounds = array<i64: 72, 72>}]} {
    %c0 = arith.constant 0 : index
    %0 = memref.load %arg1[%c0] : memref<4xi32, #tpu.memory_space<smem>>
    %c72_i32 = arith.constant 72 : i32
    %1 = arith.remsi %0, %c72_i32 : i32
    %2 = arith.sitofp %1 : i32 to f32
    %c72_i32_0 = arith.constant 72 : i32
    %3 = arith.divsi %0, %c72_i32_0 : i32
    %4 = arith.sitofp %3 : i32 to f32
    %c0_1 = arith.constant 0 : index
    %5 = memref.load %arg2[%c0_1] : memref<16xf32, #tpu.memory_space<smem>>
    %c1 = arith.constant 1 : index
    %6 = memref.load %arg2[%c1] : memref<16xf32, #tpu.memory_space<smem>>
    %c2 = arith.constant 2 : index
    %7 = memref.load %arg2[%c2] : memref<16xf32, #tpu.memory_space<smem>>
    %c3 = arith.constant 3 : index
    %8 = memref.load %arg2[%c3] : memref<16xf32, #tpu.memory_space<smem>>
    %9 = tpu.iota {dimensions = array<i32: 0>} : vector<72x72xi32>
    %10 = arith.sitofp %9 : vector<72x72xi32> to vector<72x72xf32>
    %11 = tpu.iota {dimensions = array<i32: 1>} : vector<72x72xi32>
    %12 = arith.sitofp %11 : vector<72x72xi32> to vector<72x72xf32>
    %13 = vector.broadcast %4 : f32 to vector<72x72xf32>
    %14 = arith.subf %10, %13 : vector<72x72xf32>
    %15 = vector.broadcast %2 : f32 to vector<72x72xf32>
    %16 = arith.subf %12, %15 : vector<72x72xf32>
    %cst = arith.constant -1.000000e+01 : f32
    %17 = vector.broadcast %cst : f32 to vector<72x72xf32>
    %18 = arith.cmpf oge, %14, %17 : vector<72x72xf32>
    %cst_2 = arith.constant 1.000000e+01 : f32
    %19 = vector.broadcast %cst_2 : f32 to vector<72x72xf32>
    %20 = arith.cmpf ole, %14, %19 : vector<72x72xf32>
    %21 = arith.andi %18, %20 : vector<72x72xi1>
    %cst_3 = arith.constant -1.000000e+01 : f32
    %22 = vector.broadcast %cst_3 : f32 to vector<72x72xf32>
    %23 = arith.cmpf oge, %16, %22 : vector<72x72xf32>
    %24 = arith.andi %21, %23 : vector<72x72xi1>
    %cst_4 = arith.constant 1.000000e+01 : f32
    %25 = vector.broadcast %cst_4 : f32 to vector<72x72xf32>
    %26 = arith.cmpf ole, %16, %25 : vector<72x72xf32>
    %27 = arith.andi %24, %26 : vector<72x72xi1>
    %28 = vector.broadcast %5 : f32 to vector<72x72xf32>
    %29 = arith.addf %28, %16 : vector<72x72xf32>
    %30 = vector.broadcast %6 : f32 to vector<72x72xf32>
    %31 = arith.subf %30, %16 : vector<72x72xf32>
    %32 = vector.broadcast %7 : f32 to vector<72x72xf32>
    %33 = arith.addf %32, %14 : vector<72x72xf32>
    %34 = vector.broadcast %8 : f32 to vector<72x72xf32>
    %35 = arith.subf %34, %14 : vector<72x72xf32>
    %cst_5 = arith.constant 0.000000e+00 : f32
    %36 = vector.broadcast %cst_5 : f32 to vector<72x72xf32>
    %37 = arith.cmpf oge, %29, %36 : vector<72x72xf32>
    %cst_6 = arith.constant 0.000000e+00 : f32
    %38 = vector.broadcast %cst_6 : f32 to vector<72x72xf32>
    %39 = arith.cmpf oge, %31, %38 : vector<72x72xf32>
    %40 = arith.andi %37, %39 : vector<72x72xi1>
    %cst_7 = arith.constant 0.000000e+00 : f32
    %41 = vector.broadcast %cst_7 : f32 to vector<72x72xf32>
    %42 = arith.cmpf oge, %33, %41 : vector<72x72xf32>
    %43 = arith.andi %40, %42 : vector<72x72xi1>
    %cst_8 = arith.constant 0.000000e+00 : f32
    %44 = vector.broadcast %cst_8 : f32 to vector<72x72xf32>
    %45 = arith.cmpf oge, %35, %44 : vector<72x72xf32>
    %46 = arith.andi %43, %45 : vector<72x72xi1>
    %47 = arith.andi %27, %46 : vector<72x72xi1>
    %c0_9 = arith.constant 0 : index
    %c0_10 = arith.constant 0 : index
    %c0_11 = arith.constant 0 : index
    %c0_12 = arith.constant 0 : index
    %c0_13 = arith.constant 0 : index
    %48 = vector.load %arg3[%c0_9, %c0_10, %c0_11, %c0_12, %c0_13] : memref<1x1x4x72x72xf32, #tpu.memory_space<vmem>>, vector<1x1x1x72x72xf32>
    %49 = vector.shape_cast %48 : vector<1x1x1x72x72xf32> to vector<72x72xf32>
    %c0_14 = arith.constant 0 : index
    %c0_15 = arith.constant 0 : index
    %c1_16 = arith.constant 1 : index
    %c0_17 = arith.constant 0 : index
    %c0_18 = arith.constant 0 : index
    %50 = vector.load %arg3[%c0_14, %c0_15, %c1_16, %c0_17, %c0_18] : memref<1x1x4x72x72xf32, #tpu.memory_space<vmem>>, vector<1x1x1x72x72xf32>
    %51 = vector.shape_cast %50 : vector<1x1x1x72x72xf32> to vector<72x72xf32>
    %c0_19 = arith.constant 0 : index
    %c0_20 = arith.constant 0 : index
    %c2_21 = arith.constant 2 : index
    %c0_22 = arith.constant 0 : index
    %c0_23 = arith.constant 0 : index
    %52 = vector.load %arg3[%c0_19, %c0_20, %c2_21, %c0_22, %c0_23] : memref<1x1x4x72x72xf32, #tpu.memory_space<vmem>>, vector<1x1x1x72x72xf32>
    %53 = vector.shape_cast %52 : vector<1x1x1x72x72xf32> to vector<72x72xf32>
    %c0_24 = arith.constant 0 : index
    %c0_25 = arith.constant 0 : index
    %c3_26 = arith.constant 3 : index
    %c0_27 = arith.constant 0 : index
    %c0_28 = arith.constant 0 : index
    %54 = vector.load %arg3[%c0_24, %c0_25, %c3_26, %c0_27, %c0_28] : memref<1x1x4x72x72xf32, #tpu.memory_space<vmem>>, vector<1x1x1x72x72xf32>
    %55 = vector.shape_cast %54 : vector<1x1x1x72x72xf32> to vector<72x72xf32>
    %56 = arith.addf %29, %31 : vector<72x72xf32>
    %57 = arith.addf %33, %35 : vector<72x72xf32>
    %58 = arith.mulf %56, %57 : vector<72x72xf32>
    %59 = arith.addf %49, %51 : vector<72x72xf32>
    %60 = arith.addf %53, %55 : vector<72x72xf32>
    %61 = arith.mulf %59, %60 : vector<72x72xf32>
    %62 = arith.minimumf %49, %29 : vector<72x72xf32>
    %63 = arith.minimumf %51, %31 : vector<72x72xf32>
    %64 = arith.addf %62, %63 : vector<72x72xf32>
    %65 = arith.minimumf %55, %35 : vector<72x72xf32>
    %66 = arith.minimumf %53, %33 : vector<72x72xf32>
    %67 = arith.addf %65, %66 : vector<72x72xf32>
    %68 = arith.mulf %64, %67 : vector<72x72xf32>
    %69 = arith.addf %58, %61 : vector<72x72xf32>
    %70 = arith.subf %69, %68 : vector<72x72xf32>
    %cst_29 = arith.constant 1.000000e+00 : f32
    %71 = vector.broadcast %cst_29 : f32 to vector<72x72xf32>
    %72 = arith.addf %68, %71 : vector<72x72xf32>
    %cst_30 = arith.constant 1.000000e+00 : f32
    %73 = vector.broadcast %cst_30 : f32 to vector<72x72xf32>
    %74 = arith.addf %70, %73 : vector<72x72xf32>
    %75 = tpu.reciprocal %74 : vector<72x72xf32> -> vector<72x72xf32>
    %76 = arith.mulf %72, %75 : vector<72x72xf32>
    %cst_31 = arith.constant 0.000000e+00 : f32
    %77 = vector.broadcast %cst_31 : f32 to vector<72x72xf32>
    %78 = arith.select %47, %76, %77 : vector<72x72xi1>, vector<72x72xf32>
    %c0_32 = arith.constant 0 : index
    %c0_33 = arith.constant 0 : index
    %79 = vector.load %arg4[%c0_32, %c0_33] : memref<72x72xf32, #tpu.memory_space<vmem>>, vector<72x72xf32>
    tpu.vector_store %arg4[%c0_32, %c0_33], %78 {strides = array<i32>} : memref<72x72xf32, #tpu.memory_space<vmem>>, vector<72x72xf32>,
    return
  }
  func.func @transform_0(%arg0: i32) -> i32 {
    %c0_i32 = arith.constant 0 : i32
    %c0_i32_0 = arith.constant 0 : i32
    return %c0_i32 : i32
  }
  func.func @transform_1(%arg0: i32) -> i32 {
    %c0_i32 = arith.constant 0 : i32
    %c0_i32_0 = arith.constant 0 : i32
    return %c0_i32 : i32
  }
  func.func @transform_2(%arg0: i32) -> (i32, i32, i32, i32, i32) {
    %c0_i32 = arith.constant 0 : i32
    %c0_i32_0 = arith.constant 0 : i32
    %c0_i32_1 = arith.constant 0 : i32
    %c0_i32_2 = arith.constant 0 : i32
    %c0_i32_3 = arith.constant 0 : i32
    %c0_i32_4 = arith.constant 0 : i32
    return %c0_i32, %c0_i32_0, %c0_i32_1, %c0_i32_2, %c0_i32_3 : i32, i32, i32, i32, i32
  }
  func.func @transform_3(%arg0: i32) -> (i32, i32) {
    %c0_i32 = arith.constant 0 : i32
    %c0_i32_0 = arith.constant 0 : i32
    %c0_i32_1 = arith.constant 0 : i32
    return %c0_i32, %c0_i32_0 : i32, i32
  }
}

</mosaic_0001>

<bundles_post_ra>
// kernel: dense_iou_pred.1
= control target key start
LH: loop header
LB: loop body
LE: loop exit
PB: predicated region body
PF: predicated region fallthrough
CT: control target
= control target key end

     0   :  { %8 = vsyncpa [#allocation5], 0  ;;  %s1411_s0 = inlined_call_operand.vmem [shape: s32[4], index: 0, kind: input, shape index: {}]   ;;  %s1412_s1 = inlined_call_operand.vmem [shape: f32[16], index: 1, kind: input, shape index: {}]   ;;  %s1413_s2 = inlined_call_operand.hbm [shape: f32[2,2,4,72,72], index: 2, kind: input, shape index: {}]   ;;  %s1414_s3 = inlined_call_operand.hbm [shape: f32[72,72], index: 3, kind: output, shape index: {}]  }
   0x1   :  { %9 = vsyncpa [#allocation7], 0 }
   0x2   :  { %10 = vsyncpa [#allocation3], 0 }
   0x3   :  { %11 = vsyncpa [#allocation4], 0  ;;  %s18_s14 = sshll.u32 %s1411_s0, 4  ;;  %s28_s17 = sshll.u32 %s1412_s1, 4  ;;  %s19_s14 = int_to_ptr.vmem [resolvable:$true] %s18_s14  ;;  %s29_s17 = int_to_ptr.vmem [resolvable:$true] %s28_s17 }
   0x4   :  { %s501_s18 = scalar_lea.vmem %s19_s14, 16  ;;  %p506_p1 = scmp.lt.s32.totalorder %s19_s14, %s19_s14 }
   0x5   :  { %p502_p0 = scmp.ne.s32.totalorder %s19_s14, %s501_s18  ;;  %p507_p2 = scmp.lt.s32.totalorder %s501_s18, %s501_s18 }
   0x7   :  { %p508_p3 = por %p507_p2, %p506_p1 }
   0x9   :  { %p509_p4 = pnand %p508_p3, %p502_p0 }
   0xb   :  { %512 = shalt.err (!%p509_p4)
}
   0xc   :  { %s577_s19 = smov [#allocation2]   ;;  %s513_s20 = scalar_lea.vmem %s29_s17, 16 }
   0xd   :  { %21 = dma.vmem_to_smem %s19_s14, 16, %s577_s19, [#allocation5]  }
   0xe   :  { %p514_p5 = scmp.ne.s32.totalorder %s29_s17, %s513_s20  ;;  %p518_p6 = scmp.lt.s32.totalorder %s29_s17, %s29_s17 }
   0xf   :  { %p519_p7 = scmp.lt.s32.totalorder %s513_s20, %s513_s20 }
  0x11   :  { %p520_p8 = por %p519_p7, %p518_p6 }
  0x13   :  { %p521_p9 = pnand %p520_p8, %p514_p5 }
  0x15   :  { %524 = shalt.err (!%p521_p9)
}
  0x16   :  { %s578_s0 = smov [#allocation6]   ;;  %s579_s1 = smov [#allocation8]  }
  0x17   :  { %31 = dma.vmem_to_smem %s29_s17, 16, %s578_s0, [#allocation7]  }
  0x18   :  { %s37_s21 = sshll.u32 %s579_s1, 4  ;;  %s525_s24 = scalar_lea.hbm %s1413_s2, 4608  ;;  %s38_s21 = int_to_ptr.vmem [resolvable:$true] %s37_s21 }
  0x19   :  { %p526_p10 = scmp.ne.s32.totalorder %s1413_s2, %s525_s24  ;;  %s527_s29 = scalar_lea.hbm %s1413_s2, 18432 }
  0x1a   :  { %p528_p11 = scmp.lt.u32.totalorder %s527_s29, %s525_s24  ;;  %p529_p12 = scmp.lt.u32.totalorder %s525_s24, %s1413_s2 }
  0x1c   :  { %p530_p13 = por %p529_p12, %p528_p11 }
  0x1e   :  { %p531_p0 = pnand %p530_p13, %p526_p10 }
  0x20   :  { %534 = shalt.err (!%p531_p0)
}
  0x21   :  { %s535_s5 = scalar_lea.vmem %s38_s21, 4608  ;;  %p540_p2 = scmp.lt.s32.totalorder %s38_s21, %s38_s21 }
  0x22   :  { %p536_p1 = scmp.ne.s32.totalorder %s38_s21, %s535_s5  ;;  %p541_p3 = scmp.lt.s32.totalorder %s535_s5, %s535_s5 }
  0x24   :  { %p542_p4 = por %p541_p3, %p540_p2 }
  0x26   :  { %p543_p5 = pnand %p542_p4, %p536_p1 }
  0x28   :  { %546 = shalt.err (!%p543_p5)
}
  0x29   :  { %s580_s6 = smov 128   ;;  %s581_s7 = smov 8  }
  0x2a   :  { %43 = dma.hbm_to_vmem [thread:$0]  %s1413_s2, 4608, %s38_s21, [#allocation3], %s580_s6, %s580_s6, %s581_s7  }
  0x2b   :  { %569 = dma.done.wait [#allocation5], 16  }
  0x2c   :  { %570 = vsyncadd [#allocation5], 4294967280 }
  0x2d   :  { %571 = dma.done.wait [#allocation7], 16  }
  0x2e   :  { %572 = vsyncadd [#allocation7], 4294967280 }
  0x2f   :  { %573 = dma.done.wait [#allocation3], 4608  }
  0x30   :  { %574 = vsyncadd [#allocation3], 4294962688 }
  0x31   :  { %53 = sfence }
  0x32   :  { %s627_s10 = sld [smem:[#allocation2]]  ;;  %v75_v0 = vlaneseq  ;;  %v631_v1 = vld [vmem:[#allocation8] sm:$0xff]  ;;  %v635_v3 = vld [vmem:[#allocation8 + $0x48] sm:$0xff]  ;;  %v637_v4 = vld [vmem:[#allocation8 + $0x90] sm:$0xff]  ;;  %s643_s13 = sld [smem:[#allocation6 + $0x1]] }
  0x33   :  { %v639_v5 = vld [vmem:[#allocation8 + $0xd8] sm:$0xff]  ;;  %s641_s2 = sld [smem:[#allocation6]]  ;;  %v645_v6 = vld [vmem:[#allocation8 + $0x8] sm:$0xff]  ;;  %v647_v7 = vld [vmem:[#allocation8 + $0x50] sm:$0xff]  ;;  %s649_s14 = sld [smem:[#allocation6 + $0x2]]  ;;  %v286_v9 = vadd.f32 %v635_v3, %v631_v1 }
  0x34   :  { %v633_v2 = vshrl.u32 %v75_v0, 7  ;;  %v651_v8 = vand.u32 127, %v75_v0  ;;  %v295_v10 = vadd.f32 %v639_v5, %v637_v4  ;;  %v657_v11 = vld [vmem:[#allocation8 + $0x98] sm:$0xff]  ;;  %v659_v12 = vld [vmem:[#allocation8 + $0xe0] sm:$0xff]  ;;  %v661_v13 = vld [vmem:[#allocation8 + $0x10] sm:$0xff]  ;;  %s663_s15 = sld [smem:[#allocation6 + $0x3]]  ;;  %v287_v27 = vadd.f32 %v647_v7, %v645_v6 }
  0x35   :  { %v668_v15 = vld [vmem:[#allocation8 + $0x58] sm:$0xff]  ;;  %v670_v16 = vld [vmem:[#allocation8 + $0xa0] sm:$0xff]  ;;  %v672_v17 = vld [vmem:[#allocation8 + $0xe8] sm:$0xff]  ;;  %v296_v28 = vadd.f32 %v659_v12, %v657_v11  ;;  %s582_s1 = smov [#allocation9]  }
  0x36   :  { %v666_v14 = vadd.s32 8, %v633_v2  ;;  %v674_v18 = vld [vmem:[#allocation8 + $0x18] sm:$0xff]  ;;  %v676_v19 = vld [vmem:[#allocation8 + $0x60] sm:$0xff]  ;;  %v678_v20 = vld [vmem:[#allocation8 + $0xa8] sm:$0xff]  ;;  %v96_v25 = vcvt.s32.f32 %v651_v8  ;;  %v691_v26 = vmul.f32 %v295_v10, %v286_v9  ;;  %v706_v33 = vadd.s32 16, %v633_v2  ;;  %s454_s21 = sshll.u32 %s582_s1, 4  ;;  %s455_s21 = int_to_ptr.vmem [resolvable:$true] %s454_s21 }
  0x37   :  { %v682_v22 = vld [vmem:[#allocation8 + $0xf0] sm:$0xff]  ;;  %v684_v23 = vld [vmem:[#allocation8 + $0x20] sm:$0xff]  ;;  %v686_v24 = vld [vmem:[#allocation8 + $0x68] sm:$0xff]  ;;  %v288_v34 = vadd.f32 %v668_v15, %v661_v13  ;;  %v297_v35 = vadd.f32 %v672_v17, %v670_v16  ;;  %v721_v41 = vadd.s32 24, %v633_v2  ;;  %v289_v42 = vadd.f32 %v676_v19, %v674_v18  ;;  %s547_s22 = scalar_lea.vmem %s455_s21, 1152  ;;  %p552_p8 = scmp.lt.s32.totalorder %s455_s21, %s455_s21 }
  0x38   :  { %s56_s11 = ssub.s32 0, %s627_s10  ;;  %p55_p6 = scmp.lt.s32.totalorder %s627_s10, 0  ;;  %v697_v29 = vld [vmem:[#allocation8 + $0xb0] sm:$0xff]  ;;  %v699_v30 = vld [vmem:[#allocation8 + $0xf8] sm:$0xff]  ;;  %v701_v31 = vld [vmem:[#allocation8 + $0x28] sm:$0xff]  ;;  %v86_v32 = vcvt.s32.f32 %v666_v14  ;;  %v158_v40 = vstv %s643_s13  ;;  %v298_v44 = vadd.f32 %v682_v22, %v678_v20  ;;  %v732_v45 = vadd.s32 32, %v633_v2 }
  0x39   :  { %s468_s12 = smin.u32 %s56_s11, %s627_s10  ;;  %v712_v36 = vld [vmem:[#allocation8 + $0x70] sm:$0xff]  ;;  %v714_v37 = vld [vmem:[#allocation8 + $0xb8] sm:$0xff]  ;;  %v716_v38 = vld [vmem:[#allocation8 + $0x100] sm:$0xff]  ;;  %v156_v39 = vstv %s641_s2  ;;  %v290_v46 = vadd.f32 %v686_v24, %v684_v23  ;;  %v299_v47 = vadd.f32 %v699_v30, %v697_v29  ;;  %v747_v51 = vmul.f32 %v296_v28, %v287_v27  ;;  %p548_p7 = scmp.ne.s32.totalorder %s455_s21, %s547_s22 }
  0x3a   :  { %480 = sdivrem.u32 %s468_s12, 72  ;;  %v725_v43 = vld [vmem:[#allocation8 + $0x30] sm:$0xff]  ;;  %v738_v48 = vld [vmem:[#allocation8 + $0x78] sm:$0xff]  ;;  %v740_v49 = vld [vmem:[#allocation8 + $0xc0] sm:$0xff]  ;;  %v750_v52 = vadd.s32 40, %v633_v2  ;;  %v291_v53 = vadd.f32 %v712_v36, %v701_v31  ;;  %v300_v54 = vadd.f32 %v716_v38, %v714_v37  ;;  %v757_v55 = vstv %s649_s14  ;;  %p553_p9 = scmp.lt.s32.totalorder %s547_s22, %s547_s22 }
  0x3b   :  { %1423 = vst [vmem:[#allocation14_spill] sm:$0xff] %v740_v49  ;;  %v742_v50 = vld [vmem:[#allocation8 + $0x108] sm:$0xff]  ;;  %v760_v56 = vstv %s663_s15  ;;  %v87_v57 = vcvt.s32.f32 %v706_v33  ;;  %v764_v58 = vadd.s32 48, %v633_v2  ;;  %v766_v59 = vmul.f32 %v297_v35, %v288_v34  ;;  %v773_v63 = vld [vmem:[#allocation8 + $0x38] sm:$0xff]  ;;  %v775_v0 = vld [vmem:[#allocation8 + $0x80] sm:$0xff] }
  0x3c   :  { %v88_v60 = vcvt.s32.f32 %v721_v41  ;;  %v292_v61 = vadd.f32 %v738_v48, %v725_v43  ;;  %v301_v62 = vadd.f32 %v742_v50, %v740_v49  ;;  %1424 = vst [vmem:[#allocation15_spill] sm:$0xff] %v773_v63  ;;  %1425 = vst [vmem:[#allocation16_spill] sm:$0xff] %v775_v0  ;;  %v777_v9 = vmul.f32 %v298_v44, %v289_v42  ;;  %v782_v27 = vld [vmem:[#allocation8 + $0xc8] sm:$0xff]  ;;  %v784_v28 = vld [vmem:[#allocation8 + $0x110] sm:$0xff]  ;;  %p554_p10 = por %p553_p9, %p552_p8 }
  0x3d   :  { %v780_v14 = vmul.f32 %v299_v47, %v290_v46  ;;  %1426 = vst [vmem:[#allocation17_spill] sm:$0xff] %v782_v27  ;;  %1427 = vst [vmem:[#allocation18_spill] sm:$0xff] %v784_v28  ;;  %v791_v41 = vmul.f32 %v300_v54, %v291_v53  ;;  %v793_v21 = vld [vmem:[#allocation8 + $0x40] sm:$0xff]  ;;  %v1428_v42 = vcvt.s32.f32 %v633_v2  ;;  %v800_v47 = vadd.s32 56, %v633_v2  ;;  %v810_v53 = vld [vmem:[#allocation8 + $0x118] sm:$0xff] }
  0x3e   :  { %v804_v10 = vadd.f32 %v775_v0, %v773_v63  ;;  %1431 = vst [vmem:[#allocation21_spill] sm:$0xff] %v810_v53  ;;  %v818_v46 = vmul.f32 %v301_v62, %v292_v61  ;;  %v822_v35 = vadd.f32 %v784_v28, %v782_v27  ;;  %p555_p11 = pnand %p554_p10, %p548_p7 }
  0x40   :  { %1432 = vst [vmem:[#allocation22_spill] sm:$0xff] %v818_v46 }
  0x43   :  { %s688_s16 = spop.drf %480 }
  0x44   :  { %s482_s17 = spop.drf %480  ;;  %s68_s18 = ssub.s32 0, %s688_s16 }
  0x45   :  { %s60_s19 = ssub.s32 0, %s482_s17  ;;  %s1509_s18 = smov (!%p55_p6, %s68_s18), %s688_s16 }
  0x46   :  { %s1507_s19 = smov (!%p55_p6, %s60_s19), %s482_s17  ;;  %s70_s0 = scvt.s32.f32 %s1509_s18 }
  0x47   :  { %s62_s20 = scvt.s32.f32 %s1507_s19 }
  0x48   :  { %v786_v33 = vstv %s70_s0 }
  0x49   :  { %v107_v8 = vstv %s62_s20  ;;  %v98_v44 = vsub.f32 %v1428_v42, %v786_v33  ;;  %v829_v49 = vsub.f32 %v86_v32, %v786_v33  ;;  %v852_v27 = vsub.f32 %v87_v57, %v786_v33 }
  0x4a   :  { %v788_v34 = vsub.f32 %v96_v25, %v107_v8  ;;  %v806_v25 = vld [vmem:[#allocation8 + $0x88] sm:$0xff]  ;;  %v808_v8 = vld [vmem:[#allocation8 + $0xd0] sm:$0xff] }
  0x4b   :  { %1429 = vst [vmem:[#allocation19_spill] sm:$0xff] %v806_v25  ;;  %1430 = vst [vmem:[#allocation20_spill] sm:$0xff] %v808_v8  ;;  %v161_v0 = vadd.f32 %v757_v55, %v98_v44  ;;  %v826_v63 = vsub.f32 %v760_v56, %v98_v44  ;;  %v842_v62 = vadd.f32 %v806_v25, %v793_v21  ;;  %vm109_vm0 = vcmp.ge.f32.partialorder %v98_v44, -10.0 }
  0x4c   :  { %v813_v54 = vadd.f32 %v156_v39, %v788_v34  ;;  %v816_v42 = vsub.f32 %v158_v40, %v788_v34  ;;  %v832_v39 = vadd.s32 64, %v633_v2  ;;  %v846_v28 = vadd.f32 %v810_v53, %v808_v8 }
  0x4d   :  { %1433 = vst [vmem:[#allocation23_spill] sm:$0xff] %v842_v62  ;;  %v268_v32 = vadd.f32 %v826_v63, %v161_v0  ;;  %v349_v25 = vmin.f32 %v637_v4, %v161_v0  ;;  %v859_v62 = vsub.f32 %v88_v60, %v786_v33  ;;  %v866_v57 = vsub.f32 %v760_v56, %v829_v49 }
  0x4e   :  { %v836_v40 = vadd.f32 %v816_v42, %v813_v54  ;;  %v313_v61 = vmin.f32 %v631_v1, %v813_v54  ;;  %v322_v2 = vmin.f32 %v635_v3, %v816_v42  ;;  %v340_v1 = vmin.f32 %v639_v5, %v826_v63 }
  0x4f   :  { %v162_v3 = vadd.f32 %v757_v55, %v829_v49  ;;  %vm118_vm1 = vcmp.le.f32.partialorder %v98_v44, 10.0  ;;  %v314_v5 = vmin.f32 %v645_v6, %v813_v54  ;;  %v323_v4 = vmin.f32 %v647_v7, %v816_v42 }
  0x50   :  { %v277_v53 = vmul.f32 %v268_v32, %v836_v40  ;;  %v331_v8 = vadd.f32 %v322_v2, %v313_v61  ;;  %v358_v46 = vadd.f32 %v349_v25, %v340_v1  ;;  %vm180_vm2 = vcmp.ge.f32.partialorder %v813_v54, 0.0  ;;  %vm127_vm5 = vmand %vm109_vm0, %vm118_vm1 }
  0x51   :  { %vm181_vm3 = vcmp.ge.f32.partialorder %v816_v42, 0.0  ;;  %v269_v61 = vadd.f32 %v866_v57, %v162_v3  ;;  %v332_v2 = vadd.f32 %v323_v4, %v314_v5  ;;  %v341_v25 = vmin.f32 %v659_v12, %v866_v57 }
  0x52   :  { %v376_v60 = vadd.f32 %v691_v26, %v277_v53  ;;  %v876_v32 = vmul.f32 %v358_v46, %v331_v8  ;;  %v350_v1 = vmin.f32 %v657_v11, %v162_v3  ;;  %vm136_vm4 = vcmp.ge.f32.partialorder %v788_v34, -10.0  ;;  %vm901_vm7 = vmand %vm180_vm2, %vm181_vm3 }
  0x53   :  { %v278_v6 = vmul.f32 %v269_v61, %v836_v40  ;;  %v885_v7 = vadd.f32 %v757_v55, %v852_v27  ;;  %v889_v26 = vsub.f32 %v760_v56, %v852_v27  ;;  %vm146_vm6 = vcmp.le.f32.partialorder %v788_v34, 10.0  ;;  %vm137_vm10 = vmand %vm127_vm5, %vm136_vm4 }
  0x54   :  { %v385_v12 = vsub.f32 %v376_v60, %v876_v32  ;;  %v359_v11 = vadd.f32 %v350_v1, %v341_v25  ;;  %v315_v46 = vmin.f32 %v661_v13, %v813_v54  ;;  %vm183_vm8 = vcmp.ge.f32.partialorder %v161_v0, 0.0  ;;  %vm936_vm15 = vmand %vm137_vm10, %vm146_vm6 }
  0x55   :  { %vm201_vm9 = vcmp.ge.f32.partialorder %v826_v63, 0.0  ;;  %v377_v44 = vadd.f32 %v747_v51, %v278_v6  ;;  %v270_v53 = vadd.f32 %v889_v26, %v885_v7  ;;  %v324_v13 = vmin.f32 %v668_v15, %v816_v42  ;;  %vm192_vm13 = vmand %vm901_vm7, %vm183_vm8 }
  0x56   :  { %v403_v5 = vadd.f32 1.0, %v385_v12  ;;  %v909_v4 = vmul.f32 %v359_v11, %v332_v2  ;;  %v342_v60 = vmin.f32 %v672_v17, %v889_v26  ;;  %vm110_vm11 = vcmp.ge.f32.partialorder %v829_v49, -10.0  ;;  %vm951_vm0 = vmand %vm192_vm13, %vm201_vm9 }
  0x57   :  { %vm119_vm12 = vcmp.le.f32.partialorder %v829_v49, 10.0  ;;  %v279_v51 = vmul.f32 %v270_v53, %v836_v40  ;;  %v351_v0 = vmin.f32 %v670_v16, %v885_v7  ;;  %vm184_vm14 = vcmp.ge.f32.partialorder %v162_v3, 0.0  ;;  %vm219_vm9 = vmand %vm936_vm15, %vm951_vm0 }
  0x58   :  { %483 = vrcp.f32 %v403_v5  ;;  %v386_v15 = vsub.f32 %v377_v44, %v909_v4  ;;  %v333_v17 = vadd.f32 %v324_v13, %v315_v46  ;;  %v928_v25 = vadd.f32 %v757_v55, %v859_v62  ;;  %vm968_vm2 = vmand %vm110_vm11, %vm119_vm12 }
  0x59   :  { %v360_v61 = vadd.f32 %v351_v0, %v342_v60  ;;  %v378_v2 = vadd.f32 %v766_v59, %v279_v51  ;;  %v932_v1 = vsub.f32 %v760_v56, %v859_v62  ;;  %v316_v12 = vmin.f32 %v674_v18, %v813_v54  ;;  %vm979_vm3 = vmand %vm901_vm7, %vm184_vm14 }
  0x5a   :  { %v404_v6 = vadd.f32 1.0, %v386_v15  ;;  %v325_v59 = vmin.f32 %v676_v19, %v816_v42  ;;  %v1438_v11 = vcvt.s32.f32 %v732_v45  ;;  %vm439_vm1 = vcmask 588800   ;;  %vm1004_vm11 = vmand %vm968_vm2, %vm136_vm4 }
  0x5b   :  { %v955_v53 = vmul.f32 %v360_v61, %v333_v17  ;;  %v271_v18 = vadd.f32 %v932_v1, %v928_v25  ;;  %v961_v19 = vmul.f32 %v822_v35, %v804_v10  ;;  %v93_v45 = vcvt.s32.f32 %v832_v39  ;;  %vm1041_vm2 = vmand %vm1004_vm11, %vm146_vm6 }
  0x5c   :  { %v947_v46 = vsub.f32 %v1438_v11, %v786_v33  ;;  %485 = vrcp.f32 %v404_v6  ;;  %v334_v5 = vadd.f32 %v325_v59, %v316_v12  ;;  %v343_v13 = vmin.f32 %v682_v22, %v932_v1 }
  0x5d   :  { %v352_v60 = vmin.f32 %v678_v20, %v928_v25  ;;  %vm202_vm5 = vcmp.ge.f32.partialorder %v866_v57, 0.0  ;;  %vm111_vm8 = vcmp.ge.f32.partialorder %v852_v27, -10.0  ;;  %v387_v49 = vsub.f32 %v378_v2, %v955_v53 }
  0x5e   :  { %v280_v35 = vmul.f32 %v271_v18, %v836_v40  ;;  %vm120_vm10 = vcmp.le.f32.partialorder %v852_v27, 10.0  ;;  %v994_v22 = vadd.f32 %v757_v55, %v947_v46  ;;  %v998_v3 = vsub.f32 %v760_v56, %v947_v46  ;;  %vm1018_vm12 = vmand %vm979_vm3, %vm202_vm5 }
  0x5f   :  { %v361_v20 = vadd.f32 %v352_v60, %v343_v13  ;;  %v405_v0 = vadd.f32 1.0, %v387_v49  ;;  %v317_v17 = vmin.f32 %v684_v23, %v813_v54  ;;  %v326_v61 = vmin.f32 %v686_v24, %v816_v42  ;;  %vm1029_vm14 = vmand %vm111_vm8, %vm120_vm10 }
  0x60   :  { %v379_v15 = vadd.f32 %v777_v9, %v280_v35  ;;  %v394_v2 = vadd.f32 1.0, %v876_v32  ;;  %vm185_vm13 = vcmp.ge.f32.partialorder %v885_v7, 0.0  ;;  %v272_v23 = vadd.f32 %v998_v3, %v994_v22  ;;  %vm220_vm5 = vmand %vm1041_vm2, %vm1018_vm12 }
  0x61   :  { %v1023_v12 = vmul.f32 %v361_v20, %v334_v5  ;;  %487 = vrcp.f32 %v405_v0  ;;  %v335_v9 = vadd.f32 %v326_v61, %v317_v17  ;;  %v344_v57 = vmin.f32 %v699_v30, %v998_v3  ;;  %vm1063_vm10 = vmand %vm1029_vm14, %vm136_vm4 }
  0x62   :  { %v353_v32 = vmin.f32 %v697_v29, %v994_v22  ;;  %v484_v59 = vpop.eup %483  ;;  %vm112_vm3 = vcmp.ge.f32.partialorder %v859_v62, -10.0  ;;  %v281_v18 = vmul.f32 %v272_v23, %v836_v40  ;;  %v1453_v30 = vcvt.s32.f32 %v750_v52  ;;  %vm1081_vm11 = vmand %vm901_vm7, %vm185_vm13 }
  0x63   :  { %v388_v27 = vsub.f32 %v379_v15, %v1023_v12  ;;  %v421_v29 = vmul.f32 %v484_v59, %v394_v2  ;;  %v395_v5 = vadd.f32 1.0, %v909_v4  ;;  %vm121_vm8 = vcmp.le.f32.partialorder %v859_v62, 10.0  ;;  %vm1115_vm13 = vmand %vm1063_vm10, %vm146_vm6 }
  0x64   :  { %v1051_v63 = vsub.f32 %v1453_v30, %v786_v33  ;;  %v362_v13 = vadd.f32 %v353_v32, %v344_v57  ;;  %v380_v10 = vadd.f32 %v780_v14, %v281_v18  ;;  %v318_v49 = vmin.f32 %v701_v31, %v813_v54  ;;  %vm1101_vm0 = vmand %vm112_vm3, %vm121_vm8 }
  0x65   :  { %v406_v52 = vadd.f32 1.0, %v388_v27  ;;  %v327_v4 = vmin.f32 %v712_v36, %v816_v42  ;;  %v430_v35 = vsel %vm219_vm9, %v421_v29, 0.0  ;;  %vm203_vm15 = vcmp.ge.f32.partialorder %v889_v26, 0.0  ;;  %vm1143_vm8 = vmand %vm1101_vm0, %vm136_vm4 }
  0x66   :  { %v1085_v14 = vmul.f32 %v362_v13, %v335_v9  ;;  %v1089_v31 = vadd.f32 %v757_v55, %v1051_v63  ;;  %v1093_v36 = vsub.f32 %v760_v56, %v1051_v63  ;;  %v486_v16 = vpop.eup %485  ;;  %440 = vst.msk [vmem:[#allocation9] sm:$0xff] %vm439_vm1, %v430_v35  ;;  %vm186_vm9 = vcmp.ge.f32.partialorder %v928_v25, 0.0  ;;  %vm1124_vm3 = vmand %vm1081_vm11, %vm203_vm15 }
  0x67   :  { %489 = vrcp.f32 %v406_v52  ;;  %v1460_v44 = vcvt.s32.f32 %v764_v58  ;;  %v422_v0 = vmul.f32 %v486_v16, %v395_v5  ;;  %v396_v62 = vadd.f32 1.0, %v955_v53  ;;  %vm1155_vm12 = vmand %vm901_vm7, %vm186_vm9  ;;  %v1476_v52 = vld [vmem:[#allocation14_spill] sm:$0xff] }
  0x68   :  { %vm204_vm14 = vcmp.ge.f32.partialorder %v932_v1, 0.0  ;;  %v389_v15 = vsub.f32 %v380_v10, %v1085_v14  ;;  %v273_v17 = vadd.f32 %v1093_v36, %v1089_v31  ;;  %v336_v61 = vadd.f32 %v327_v4, %v318_v49  ;;  %vm221_vm2 = vmand %vm1115_vm13, %vm1124_vm3  ;;  %v1479_v4 = vld [vmem:[#allocation15_spill] sm:$0xff]  ;;  %v1483_v58 = vld [vmem:[#allocation22_spill] sm:$0xff] }
  0x69   :  { %v1109_v51 = vsub.f32 %v1460_v44, %v786_v33  ;;  %v345_v2 = vmin.f32 %v716_v38, %v1093_v36  ;;  %v354_v53 = vmin.f32 %v714_v37, %v1089_v31  ;;  %v431_v23 = vsel %vm220_vm5, %v422_v0, 0.0  ;;  %vm1184_vm11 = vmand %vm1143_vm8, %vm146_vm6  ;;  %v1480_v0 = vld [vmem:[#allocation16_spill] sm:$0xff] }
  0x6a   :  { %vm113_vm10 = vcmp.ge.f32.partialorder %v947_v46, -10.0  ;;  %v407_v38 = vadd.f32 1.0, %v389_v15  ;;  %v319_v37 = vmin.f32 %v725_v43, %v813_v54  ;;  %441 = vst.msk [vmem:[#allocation9 + $0x8] sm:$0xff] %vm439_vm1, %v431_v23  ;;  %v282_v9 = vmul.f32 %v273_v17, %v836_v40  ;;  %vm1196_vm0 = vmand %vm1155_vm12, %vm204_vm14 }
  0x6b   :  { %v363_v57 = vadd.f32 %v354_v53, %v345_v2  ;;  %v1162_v32 = vadd.f32 %v757_v55, %v1109_v51  ;;  %v1166_v43 = vsub.f32 %v760_v56, %v1109_v51  ;;  %v488_v59 = vpop.eup %487  ;;  %vm122_vm5 = vcmp.le.f32.partialorder %v947_v46, 10.0  ;;  %vm222_vm8 = vmand %vm1184_vm11, %vm1196_vm0 }
  0x6c   :  { %491 = vrcp.f32 %v407_v38  ;;  %v328_v25 = vmin.f32 %v738_v48, %v816_v42  ;;  %v1469_v11 = vcvt.s32.f32 %v800_v47  ;;  %v423_v18 = vmul.f32 %v488_v59, %v396_v62  ;;  %vm1210_vm13 = vmand %vm113_vm10, %vm122_vm5 }
  0x6d   :  { %vm187_vm15 = vcmp.ge.f32.partialorder %v994_v22, 0.0  ;;  %v1189_v29 = vmul.f32 %v363_v57, %v336_v61  ;;  %v381_v48 = vadd.f32 %v791_v41, %v282_v9  ;;  %v397_v5 = vadd.f32 1.0, %v1023_v12  ;;  %vm1246_vm10 = vmand %vm1210_vm13, %vm136_vm4  ;;  %v1484_v61 = vld [vmem:[#allocation17_spill] sm:$0xff]  ;;  %v1489_v9 = vld [vmem:[#allocation18_spill] sm:$0xff] }
  0x6e   :  { %v1178_v27 = vsub.f32 %v1469_v11, %v786_v33  ;;  %vm114_vm9 = vcmp.ge.f32.partialorder %v1051_v63, -10.0  ;;  %v274_v13 = vadd.f32 %v1166_v43, %v1162_v32  ;;  %v346_v22 = vmin.f32 %v742_v50, %v1166_v43  ;;  %vm1220_vm14 = vmand %vm901_vm7, %vm187_vm15 }
  0x6f   :  { %v432_v60 = vsel %vm221_vm2, %v423_v18, 0.0  ;;  %v390_v1 = vsub.f32 %v381_v48, %v1189_v29  ;;  %v337_v12 = vadd.f32 %v328_v25, %v319_v37  ;;  %v355_v10 = vmin.f32 %v1476_v52, %v1162_v32  ;;  %vm1283_vm11 = vmand %vm1246_vm10, %vm146_vm6 }
  0x70   :  { %442 = vst.msk [vmem:[#allocation9 + $0x10] sm:$0xff] %vm439_vm1, %v432_v60  ;;  %vm123_vm3 = vcmp.le.f32.partialorder %v1051_v63, 10.0  ;;  %v283_v46 = vmul.f32 %v274_v13, %v836_v40  ;;  %v1228_v49 = vadd.f32 %v757_v55, %v1178_v27  ;;  %v320_v35 = vmin.f32 %v1479_v4, %v813_v54 }
  0x71   :  { %v490_v20 = vpop.eup %489  ;;  %v408_v16 = vadd.f32 1.0, %v390_v1  ;;  %v364_v7 = vadd.f32 %v355_v10, %v346_v22  ;;  %v1238_v44 = vsub.f32 %v760_v56, %v1178_v27  ;;  %v329_v26 = vmin.f32 %v1480_v0, %v816_v42  ;;  %vm1267_vm5 = vmand %vm114_vm9, %vm123_vm3  ;;  %v1497_v22 = vld [vmem:[#allocation19_spill] sm:$0xff] }
  0x72   :  { %v424_v62 = vmul.f32 %v490_v20, %v397_v5  ;;  %vm205_vm12 = vcmp.ge.f32.partialorder %v998_v3, 0.0  ;;  %v382_v17 = vadd.f32 %v1483_v58, %v283_v46  ;;  %v356_v2 = vmin.f32 %v1484_v61, %v1228_v49 }
  0x73   :  { %vm1256_vm2 = vmand %vm1220_vm14, %vm205_vm12  ;;  %v398_v23 = vadd.f32 1.0, %v1085_v14  ;;  %493 = vrcp.f32 %v408_v16  ;;  %v373_v24 = vmul.f32 %v364_v7, %v337_v12  ;;  %v275_v38 = vadd.f32 %v1238_v44, %v1228_v49 }
  0x74   :  { %v433_v37 = vsel %vm222_vm8, %v424_v62, 0.0  ;;  %v338_v6 = vadd.f32 %v329_v26, %v320_v35  ;;  %v347_v57 = vmin.f32 %v1489_v9, %v1238_v44  ;;  %v1276_v14 = vsub.f32 %v93_v45, %v786_v33  ;;  %vm223_vm9 = vmand %vm1283_vm11, %vm1256_vm2 }
  0x75   :  { %443 = vst.msk [vmem:[#allocation9 + $0x18] sm:$0xff] %vm439_vm1, %v433_v37  ;;  %vm188_vm15 = vcmp.ge.f32.partialorder %v1089_v31, 0.0  ;;  %vm115_vm0 = vcmp.ge.f32.partialorder %v1109_v51, -10.0  ;;  %v391_v59 = vsub.f32 %v382_v17, %v373_v24  ;;  %v284_v25 = vmul.f32 %v275_v38, %v836_v40  ;;  %vm1305_vm14 = vmand %vm1267_vm5, %vm136_vm4 }
  0x76   :  { %v492_v39 = vpop.eup %491  ;;  %vm124_vm13 = vcmp.le.f32.partialorder %v1109_v51, 10.0  ;;  %v365_v33 = vadd.f32 %v356_v2, %v347_v57  ;;  %v1297_v45 = vadd.f32 %v757_v55, %v1276_v14  ;;  %v321_v11 = vmin.f32 %v793_v21, %v813_v54  ;;  %vm1318_vm3 = vmand %vm901_vm7, %vm188_vm15  ;;  %v1496_v54 = vld [vmem:[#allocation23_spill] sm:$0xff]  ;;  %v1501_v51 = vld [vmem:[#allocation21_spill] sm:$0xff] }
  0x77   :  { %v425_v18 = vmul.f32 %v492_v39, %v398_v23  ;;  %v409_v48 = vadd.f32 1.0, %v391_v59  ;;  %v383_v47 = vadd.f32 %v961_v19, %v284_v25  ;;  %v1312_v5 = vsub.f32 %v760_v56, %v1276_v14  ;;  %v1498_v19 = vld [vmem:[#allocation20_spill] sm:$0xff]  ;;  %vm133_vm10 = vmand %vm115_vm0, %vm124_vm13 }
  0x78   :  { %v374_v55 = vmul.f32 %v365_v33, %v338_v6  ;;  %v312_v13 = vmul.f32 %v846_v28, %v1496_v54  ;;  %v330_v60 = vmin.f32 %v1497_v22, %v816_v42  ;;  %v357_v41 = vmin.f32 %v1498_v19, %v1297_v45  ;;  %vm1340_vm12 = vmand %vm1305_vm14, %vm146_vm6 }
  0x79   :  { %v434_v56 = vsel %vm223_vm9, %v425_v18, 0.0  ;;  %vm206_vm8 = vcmp.ge.f32.partialorder %v1093_v36, 0.0  ;;  %495 = vrcp.f32 %v409_v48  ;;  %v276_v31 = vadd.f32 %v1312_v5, %v1297_v45  ;;  %vm143_vm11 = vmand %vm133_vm10, %vm136_vm4 }
  0x7a   :  { %444 = vst.msk [vmem:[#allocation9 + $0x20] sm:$0xff] %vm439_vm1, %v434_v56  ;;  %vm189_vm2 = vcmp.ge.f32.partialorder %v1162_v32, 0.0  ;;  %v392_v42 = vsub.f32 %v383_v47, %v374_v55  ;;  %v339_v36 = vadd.f32 %v330_v60, %v321_v11  ;;  %v348_v1 = vmin.f32 %v1501_v51, %v1312_v5  ;;  %vm1349_vm5 = vmand %vm1318_vm3, %vm206_vm8 }
  0x7b   :  { %v285_v52 = vmul.f32 %v276_v31, %v836_v40  ;;  %v399_v10 = vadd.f32 1.0, %v1189_v29  ;;  %vm198_vm15 = vmand %vm901_vm7, %vm189_vm2  ;;  %vm116_vm0 = vcmp.ge.f32.partialorder %v1178_v27, -10.0  ;;  %vm125_vm13 = vcmp.le.f32.partialorder %v1178_v27, 10.0 }
  0x7c   :  { %v410_v50 = vadd.f32 1.0, %v392_v42  ;;  %v366_v32 = vadd.f32 %v357_v41, %v348_v1  ;;  %vm224_vm9 = vmand %vm1340_vm12, %vm1349_vm5  ;;  %vm207_vm3 = vcmp.ge.f32.partialorder %v1166_v43, 0.0  ;;  %vm190_vm8 = vcmp.ge.f32.partialorder %v1228_v49, 0.0 }
  0x7d   :  { %v494_v46 = vpop.eup %493  ;;  %v384_v4 = vadd.f32 %v312_v13, %v285_v52  ;;  %vm1367_vm14 = vmand %vm143_vm11, %vm146_vm6  ;;  %v400_v7 = vadd.f32 1.0, %v373_v24  ;;  %v401_v49 = vadd.f32 1.0, %v374_v55 }
  0x7e   :  { %v426_v40 = vmul.f32 %v494_v46, %v399_v10  ;;  %497 = vrcp.f32 %v410_v50  ;;  %v375_v29 = vmul.f32 %v366_v32, %v339_v36  ;;  %vm216_vm10 = vmand %vm198_vm15, %vm207_vm3 }
  0x7f   :  { %vm134_vm12 = vmand %vm116_vm0, %vm125_vm13  ;;  %vm117_vm0 = vcmp.ge.f32.partialorder %v1276_v14, -10.0  ;;  %vm126_vm13 = vcmp.le.f32.partialorder %v1276_v14, 10.0 }
  0x80   :  { %v435_v20 = vsel %vm224_vm9, %v426_v40, 0.0  ;;  %v393_v16 = vsub.f32 %v384_v4, %v375_v29  ;;  %vm199_vm2 = vmand %vm901_vm7, %vm190_vm8  ;;  %vm208_vm9 = vcmp.ge.f32.partialorder %v1238_v44, 0.0  ;;  %v402_v58 = vadd.f32 1.0, %v375_v29 }
  0x81   :  { %445 = vst.msk [vmem:[#allocation9 + $0x28] sm:$0xff] %vm439_vm1, %v435_v20  ;;  %vm225_vm5 = vmand %vm1367_vm14, %vm216_vm10  ;;  %vm191_vm14 = vcmp.ge.f32.partialorder %v1297_v45, 0.0 }
  0x82   :  { %v411_v27 = vadd.f32 1.0, %v393_v16  ;;  %vm144_vm11 = vmand %vm134_vm12, %vm136_vm4 }
  0x83   :  { %v496_v0 = vpop.eup %495  ;;  %vm217_vm15 = vmand %vm199_vm2, %vm208_vm9 }
  0x84   :  { %v427_v26 = vmul.f32 %v496_v0, %v400_v7  ;;  %499 = vrcp.f32 %v411_v27  ;;  %vm154_vm3 = vmand %vm144_vm11, %vm146_vm6 }
  0x85   :  { %vm226_vm8 = vmand %vm154_vm3, %vm217_vm15 }
  0x86   :  { %v436_v43 = vsel %vm225_vm5, %v427_v26, 0.0  ;;  %vm135_vm10 = vmand %vm117_vm0, %vm126_vm13  ;;  %vm209_vm5 = vcmp.ge.f32.partialorder %v1312_v5, 0.0 }
  0x87   :  { %446 = vst.msk [vmem:[#allocation9 + $0x30] sm:$0xff] %vm439_vm1, %v436_v43  ;;  %vm200_vm12 = vmand %vm901_vm7, %vm191_vm14 }
  0x88   :  { %v498_v62 = vpop.eup %497  ;;  %vm145_vm2 = vmand %vm135_vm10, %vm136_vm4 }
  0x89   :  { %v428_v15 = vmul.f32 %v498_v62, %v401_v49  ;;  %vm218_vm9 = vmand %vm200_vm12, %vm209_vm5 }
  0x8a   :  { %vm155_vm11 = vmand %vm145_vm2, %vm146_vm6 }
  0x8b   :  { %v437_v44 = vsel %vm226_vm8, %v428_v15, 0.0  ;;  %vm227_vm15 = vmand %vm155_vm11, %vm218_vm9 }
  0x8c   :  { %447 = vst.msk [vmem:[#allocation9 + $0x38] sm:$0xff] %vm439_vm1, %v437_v44 }
  0x8e   :  { %v500_v17 = vpop.eup %499 }
  0x8f   :  { %v429_v61 = vmul.f32 %v500_v17, %v402_v58 }
  0x91   :  { %v438_v8 = vsel %vm227_vm15, %v429_v61, 0.0 }
  0x92   :  { %448 = vst.msk [vmem:[#allocation9 + $0x40] sm:$0xff] %vm439_vm1, %v438_v8 }
  0x93   :  { %558 = shalt.err (!%p555_p11)
}
  0x94   :  { %s559_s25 = scalar_lea.hbm %s1414_s3, 1152 }
  0x95   :  { %p560_p12 = scmp.ne.s32.totalorder %s1414_s3, %s559_s25  ;;  %p563_p13 = scmp.lt.u32.totalorder %s559_s25, %s1414_s3 }
  0x97   :  { %p565_p0 = pnand %p563_p13, %p560_p12 }
  0x99   :  { %568 = shalt.err (!%p565_p0)
}
  0x9a   :  { %460 = dma.vmem_to_hbm [thread:$0]  %s455_s21, 1152, %s1414_s3, [#allocation4], %s580_s6, %s580_s6, %s581_s7  }
  0x9b   :  { %575 = dma.done.wait [#allocation4], 1152  }
  0x9c   :  { %576 = vsyncadd [#allocation4], 4294966144 }
  0x9d   :  { %464 = vsyncpa [#allocation3], 1 }
  0x9e   :  { %465 = vsyncpa [#allocation4], 1 }
  0x9f   :  { %466 = vsyncpa [#allocation5], 1 }
  0xa0   :  { %467 = vsyncpa [#allocation7], 1 }

</bundles_post_ra>
